<compile_context>
chip_gen: v7x
topology: tpu7x:2x2x1
jax: 0.10.0
libtpu: 0.0.40
codegen_flags: <defaults>
</compile_context>

<pallas_src>
import functools

import jax
import jax.numpy as jnp
from jax.experimental import pallas as pl
from jax.experimental.pallas import tpu as pltpu

_EPS = 1e-5  # torch.nn.GroupNorm default eps


def _bottleneck_kernel(H, W, C,
                       x_ref, w1_ref, w2_ref, w3_ref,
                       g1_ref, b1_ref, g2_ref, b2_ref, g3_ref, b3_ref,
                       gavg_ref, mask_ref, o_ref):
    HW = H * W
    x = x_ref[0].astype(jnp.float32)          # (C, HW): residual + conv1 input
    gavg = gavg_ref[...]                      # (C, C), rows pre-scaled by 1/(Cg*HW)

    def group_norm(y, g_ref, b_ref):
        # y: (C, HW) f32. Centered (two-pass) moments: numerically safer than
        # E[x^2]-E[x]^2, moment math stays in f32.
        sum_c = jnp.sum(y, axis=1, keepdims=True)                              # (C, 1)
        mean_g = jnp.dot(gavg, sum_c, preferred_element_type=jnp.float32)      # (C, 1)
        d = y - mean_g
        ssq_c = jnp.sum(d * d, axis=1, keepdims=True)                          # (C, 1)
        var_g = jnp.dot(gavg, ssq_c, preferred_element_type=jnp.float32)       # (C, 1)
        inv = jax.lax.rsqrt(var_g + _EPS)
        return d * inv * g_ref[...] + b_ref[...]

    # ---- conv1 (1x1) + gn1 + relu : bf16 MXU, f32 accumulate ----
    h = jnp.dot(w1_ref[...], x.astype(jnp.bfloat16),
                preferred_element_type=jnp.float32)                            # (C, HW)
    h = jnp.maximum(group_norm(h, g1_ref, b1_ref), 0.0)

    # ---- conv2 (3x3, padding=1) + gn2 + relu ----
    # 9 shifted taps via XLU rolls along the lane (spatial) axis + precomputed
    # boundary masks; all taps stacked on sublanes -> one fat K=9C matmul.
    taps = []
    for kh in range(3):
        dh = kh - 1
        h_row = h if dh == 0 else pltpu.roll(h, shift=(-dh * W) % HW, axis=1)
        for kw in range(3):
            dw = kw - 1
            tap = h_row if dw == 0 else pltpu.roll(h_row, shift=(-dw) % HW, axis=1)
            k = kh * 3 + kw
            if k != 4:                                   # center tap needs no mask
                tap = tap * mask_ref[k:k + 1, :]         # (1, HW) edge-valid mask
            taps.append(tap)
    taps = jnp.concatenate(taps, axis=0).astype(jnp.bfloat16)                  # (9C, HW)
    h = jnp.dot(w2_ref[...], taps, preferred_element_type=jnp.float32)         # (C, HW)
    h = jnp.maximum(group_norm(h, g2_ref, b2_ref), 0.0)

    # ---- conv3 (1x1) + gn3 + residual + relu ----
    h = jnp.dot(w3_ref[...], h.astype(jnp.bfloat16),
                preferred_element_type=jnp.float32)
    h = group_norm(h, g3_ref, b3_ref)
    o_ref[0] = jnp.maximum(h + x, 0.0).astype(o_ref.dtype)


def simple_bottleneck(x_nchw, params, *, num_groups):
    N, C, H, W = x_nchw.shape
    HW = H * W
    assert C % num_groups == 0

    # Keep NCHW; flattening spatial dims is a free reshape (no HBM transpose).
    x = x_nchw.reshape(N, C, HW)

    # Group-averaging matrix folding 1/(Cg*HW): gavg @ per-channel-sums = group mean.
    cg = C // num_groups
    gid = jnp.arange(C) // cg
    gavg = (gid[:, None] == gid[None, :]).astype(jnp.float32) / (cg * HW)

    # Per-tap boundary-valid masks (tap k = kh*3 + kw), precomputed once here so
    # the kernel does no per-element // or % and no per-tap compare chains.
    idx = jnp.arange(HW)
    r, c = idx // W, idx % W
    ones = jnp.ones((HW,), bool)
    row_ok = {-1: r > 0, 0: ones, 1: r < H - 1}
    col_ok = {-1: c > 0, 0: ones, 1: c < W - 1}
    masks = jnp.stack([(row_ok[kh - 1] & col_ok[kw - 1]).astype(jnp.float32)
                       for kh in range(3) for kw in range(3)], axis=0)          # (9, HW)

    # Weights in bf16 for the MXU (f32 accumulation inside the kernel).
    w1 = params["w1"].astype(jnp.bfloat16)                                      # (Cout, Cin)
    w3 = params["w3"].astype(jnp.bfloat16)
    # (Cout, Cin, 3, 3) OIHW -> (Cout, kh, kw, Cin) -> (Cout, 9*Cin), tap-major K.
    w2 = jnp.transpose(params["w2"], (0, 2, 3, 1)).reshape(C, 9 * C).astype(jnp.bfloat16)

    gb = [params[k].reshape(C, 1).astype(jnp.float32)
          for k in ("g1", "b1", "g2", "b2", "g3", "b3")]

    kernel = functools.partial(_bottleneck_kernel, H, W, C)

    def full(shape):
        return pl.BlockSpec(shape, lambda n, _s=shape: (0,) * len(_s))

    # TODO(synk): at production H*W*C, add a second 'parallel' grid axis tiling HW
    # into row blocks (1-row halo for the 3x3) and set vmem_limit_bytes with
    # headroom (v5e 16 MiB default / v7x 64 MiB physical); whole-image blocks are
    # fine at this demo size.
    out = pl.pallas_call(
        kernel,
        out_shape=jax.ShapeDtypeStruct((N, C, HW), x_nchw.dtype),
        grid=(N,),
        in_specs=[
            pl.BlockSpec((1, C, HW), lambda n: (n, 0, 0)),   # x (lane-dense)
            full((C, C)),                                    # w1
            full((C, 9 * C)),                                # w2 (stacked taps)
            full((C, C)),                                    # w3
            full((C, 1)), full((C, 1)),                      # gn1 gamma/beta
            full((C, 1)), full((C, 1)),                      # gn2 gamma/beta
            full((C, 1)), full((C, 1)),                      # gn3 gamma/beta
            full((C, C)),                                    # group-averaging matrix
            full((9, HW)),                                   # per-tap edge masks
        ],
        out_specs=pl.BlockSpec((1, C, HW), lambda n: (n, 0, 0)),
        compiler_params=pltpu.CompilerParams(
            dimension_semantics=("parallel",)),
    )(x, w1, w2, w3, *gb, gavg, masks)

    return out.reshape(N, C, H, W)


# ---------------- pure-JAX reference (for correctness check) ----------------
def _ref_forward(x_nchw, params, num_groups):
    C = x_nchw.shape[1]

    def gn(y, g, b):
        n, c, h, w = y.shape
        yg = y.reshape(n, num_groups, (c // num_groups) * h * w)
        m = yg.mean(-1, keepdims=True)
        v = yg.var(-1, keepdims=True)
        yn = ((yg - m) / jnp.sqrt(v + _EPS)).reshape(n, c, h, w)
        return yn * g.reshape(1, c, 1, 1) + b.reshape(1, c, 1, 1)

    def conv1x1(y, w):  # w: (Cout, Cin)
        return jnp.einsum("nchw,oc->nohw", y, w)

    def conv3x3(y, w):  # w: OIHW (Cout, Cin, 3, 3)
        return jax.lax.conv_general_dilated(
            y, w, window_strides=(1, 1), padding=((1, 1), (1, 1)),
            dimension_numbers=("NCHW", "OIHW", "NCHW"))

    relu = lambda t: jnp.maximum(t, 0.0)
    out = relu(gn(conv1x1(x_nchw, params["w1"]), params["g1"], params["b1"]))
    out = relu(gn(conv3x3(out, params["w2"]), params["g2"], params["b2"]))
    out = gn(conv1x1(out, params["w3"]), params["g3"], params["b3"])
    return relu(out + x_nchw)


if __name__ == "__main__":
    N, C, H, W = 2, 8, 16, 16
    num_groups = 4  # TODO(synk): upstream L.GroupNorm group count unspecified; using 4 groups.

    key = jax.random.PRNGKey(0)
    kx, k1, k2, k3, kg = jax.random.split(key, 5)
    gk = jax.random.split(kg, 6)

    x = jax.random.normal(kx, (N, C, H, W), jnp.float32)
    params = {
        "w1": jax.random.normal(k1, (C, C), jnp.float32) * 0.2,          # 1x1 conv (Cout, Cin)
        "w2": jax.random.normal(k2, (C, C, 3, 3), jnp.float32) * 0.1,    # 3x3 conv OIHW
        "w3": jax.random.normal(k3, (C, C), jnp.float32) * 0.2,          # 1x1 conv (Cout, Cin)
        "g1": 1.0 + 0.1 * jax.random.normal(gk[0], (C,), jnp.float32),
        "b1": 0.1 * jax.random.normal(gk[1], (C,), jnp.float32),
        "g2": 1.0 + 0.1 * jax.random.normal(gk[2], (C,), jnp.float32),
        "b2": 0.1 * jax.random.normal(gk[3], (C,), jnp.float32),
        "g3": 1.0 + 0.1 * jax.random.normal(gk[4], (C,), jnp.float32),
        "b3": 0.1 * jax.random.normal(gk[5], (C,), jnp.float32),
    }

    out = simple_bottleneck(x, params, num_groups=num_groups)
    out = jax.block_until_ready(out)
    assert out.shape == (N, C, H, W), out.shape

    ref = jax.block_until_ready(_ref_forward(x, params, num_groups))
    # bf16 MXU matmuls (f32 accumulation) give ~0.3% relative error per stage;
    # expected max abs error here is ~1e-2, well inside the 5e-2 tolerance.
    max_err = float(jnp.max(jnp.abs(out - ref)))
    assert max_err < 5e-2, f"mismatch vs reference: max_err={max_err}"

    print("KERNEL_OK")
</pallas_src>

<mosaic_0001>
module attributes {stable_mosaic.version = 11 : i64} {
  func.func @_bottleneck_kernel(%arg0: i32, %arg1: memref<1x8x256xf32, #tpu.memory_space<vmem>>, %arg2: memref<8x8xbf16, #tpu.memory_space<vmem>>, %arg3: memref<8x72xbf16, #tpu.memory_space<vmem>>, %arg4: memref<8x8xbf16, #tpu.memory_space<vmem>>, %arg5: memref<8x1xf32, #tpu.memory_space<vmem>>, %arg6: memref<8x1xf32, #tpu.memory_space<vmem>>, %arg7: memref<8x1xf32, #tpu.memory_space<vmem>>, %arg8: memref<8x1xf32, #tpu.memory_space<vmem>>, %arg9: memref<8x1xf32, #tpu.memory_space<vmem>>, %arg10: memref<8x1xf32, #tpu.memory_space<vmem>>, %arg11: memref<8x8xf32, #tpu.memory_space<vmem>>, %arg12: memref<9x256xf32, #tpu.memory_space<vmem>>, %arg13: memref<1x8x256xf32, #tpu.memory_space<vmem>>) attributes {dimension_semantics = [#tpu.dimension_semantics<parallel>], iteration_bounds = array<i64: 2>, scalar_prefetch = 0 : i64, scratch_operands = 0 : i64, tpu.core_type = #tpu.core_type<tc>, window_params = [{transform_indices = @transform_0, window_bounds = array<i64: 1, 8, 256>}, {pipeline_mode = #tpu.pipeline_mode<synchronous>, transform_indices = @transform_1, window_bounds = array<i64: 8, 8>}, {pipeline_mode = #tpu.pipeline_mode<synchronous>, transform_indices = @transform_2, window_bounds = array<i64: 8, 72>}, {pipeline_mode = #tpu.pipeline_mode<synchronous>, transform_indices = @transform_3, window_bounds = array<i64: 8, 8>}, {pipeline_mode = #tpu.pipeline_mode<synchronous>, transform_indices = @transform_4, window_bounds = array<i64: 8, 1>}, {pipeline_mode = #tpu.pipeline_mode<synchronous>, transform_indices = @transform_5, window_bounds = array<i64: 8, 1>}, {pipeline_mode = #tpu.pipeline_mode<synchronous>, transform_indices = @transform_6, window_bounds = array<i64: 8, 1>}, {pipeline_mode = #tpu.pipeline_mode<synchronous>, transform_indices = @transform_7, window_bounds = array<i64: 8, 1>}, {pipeline_mode = #tpu.pipeline_mode<synchronous>, transform_indices = @transform_8, window_bounds = array<i64: 8, 1>}, {pipeline_mode = #tpu.pipeline_mode<synchronous>, transform_indices = @transform_9, window_bounds = array<i64: 8, 1>}, {pipeline_mode = #tpu.pipeline_mode<synchronous>, transform_indices = @transform_10, window_bounds = array<i64: 8, 8>}, {pipeline_mode = #tpu.pipeline_mode<synchronous>, transform_indices = @transform_11, window_bounds = array<i64: 9, 256>}, {transform_indices = @transform_12, window_bounds = array<i64: 1, 8, 256>}]} {
    %c0 = arith.constant 0 : index
    %c0_0 = arith.constant 0 : index
    %c0_1 = arith.constant 0 : index
    %0 = vector.load %arg1[%c0, %c0_0, %c0_1] : memref<1x8x256xf32, #tpu.memory_space<vmem>>, vector<1x8x256xf32>
    %1 = vector.shape_cast %0 : vector<1x8x256xf32> to vector<8x256xf32>
    %c0_2 = arith.constant 0 : index
    %c0_3 = arith.constant 0 : index
    %2 = vector.load %arg11[%c0_2, %c0_3] : memref<8x8xf32, #tpu.memory_space<vmem>>, vector<8x8xf32>
    %c0_4 = arith.constant 0 : index
    %c0_5 = arith.constant 0 : index
    %3 = vector.load %arg2[%c0_4, %c0_5] : memref<8x8xbf16, #tpu.memory_space<vmem>>, vector<8x8xbf16>
    %4 = arith.truncf %1 : vector<8x256xf32> to vector<8x256xbf16>
    %cst = arith.constant dense<0.000000e+00> : vector<8x256xf32>
    %5 = tpu.matmul %3, %4, %cst {dimension_numbers = #tpu.dot_dimension_numbers<[1], [0], [0], [1], [0, 0, 1, 1], [], []>} : vector<8x8xbf16>, vector<8x256xbf16>, vector<8x256xf32> -> vector<8x256xf32>
    %cst_6 = arith.constant dense<0.000000e+00> : vector<8xf32>
    %6 = vector.multi_reduction <add>, %5, %cst_6 [1] : vector<8x256xf32> to vector<8xf32>
    %7 = vector.shape_cast %6 : vector<8xf32> to vector<8x1xf32>
    %cst_7 = arith.constant dense<0.000000e+00> : vector<8x1xf32>
    %8 = tpu.matmul %2, %7, %cst_7 {dimension_numbers = #tpu.dot_dimension_numbers<[1], [0], [0], [1], [0, 0, 1, 1], [], []>} : vector<8x8xf32>, vector<8x1xf32>, vector<8x1xf32> -> vector<8x1xf32>
    %9 = vector.broadcast %8 : vector<8x1xf32> to vector<8x256xf32>
    %10 = arith.subf %5, %9 : vector<8x256xf32>
    %11 = arith.mulf %10, %10 : vector<8x256xf32>
    %cst_8 = arith.constant dense<0.000000e+00> : vector<8xf32>
    %12 = vector.multi_reduction <add>, %11, %cst_8 [1] : vector<8x256xf32> to vector<8xf32>
    %13 = vector.shape_cast %12 : vector<8xf32> to vector<8x1xf32>
    %cst_9 = arith.constant dense<0.000000e+00> : vector<8x1xf32>
    %14 = tpu.matmul %2, %13, %cst_9 {dimension_numbers = #tpu.dot_dimension_numbers<[1], [0], [0], [1], [0, 0, 1, 1], [], []>} : vector<8x8xf32>, vector<8x1xf32>, vector<8x1xf32> -> vector<8x1xf32>
    %cst_10 = arith.constant 9.99999974E-6 : f32
    %15 = vector.broadcast %cst_10 : f32 to vector<8x1xf32>
    %16 = arith.addf %14, %15 : vector<8x1xf32>
    %17 = math.rsqrt %16 : vector<8x1xf32>
    %18 = vector.broadcast %17 : vector<8x1xf32> to vector<8x256xf32>
    %19 = arith.mulf %10, %18 : vector<8x256xf32>
    %c0_11 = arith.constant 0 : index
    %c0_12 = arith.constant 0 : index
    %20 = vector.load %arg5[%c0_11, %c0_12] : memref<8x1xf32, #tpu.memory_space<vmem>>, vector<8x1xf32>
    %21 = vector.broadcast %20 : vector<8x1xf32> to vector<8x256xf32>
    %22 = arith.mulf %19, %21 : vector<8x256xf32>
    %c0_13 = arith.constant 0 : index
    %c0_14 = arith.constant 0 : index
    %23 = vector.load %arg6[%c0_13, %c0_14] : memref<8x1xf32, #tpu.memory_space<vmem>>, vector<8x1xf32>
    %24 = vector.broadcast %23 : vector<8x1xf32> to vector<8x256xf32>
    %25 = arith.addf %22, %24 : vector<8x256xf32>
    %cst_15 = arith.constant 0.000000e+00 : f32
    %26 = vector.broadcast %cst_15 : f32 to vector<8x256xf32>
    %27 = arith.maximumf %25, %26 : vector<8x256xf32>
    %c16_i32 = arith.constant 16 : i32
    %28 = tpu.dynamic_rotate %27 by %c16_i32 dim 1 : vector<8x256xf32>, i32 -> vector<8x256xf32>
    %c1_i32 = arith.constant 1 : i32
    %29 = tpu.dynamic_rotate %28 by %c1_i32 dim 1 : vector<8x256xf32>, i32 -> vector<8x256xf32>
    %c0_16 = arith.constant 0 : index
    %c0_17 = arith.constant 0 : index
    %30 = vector.load %arg12[%c0_16, %c0_17] : memref<9x256xf32, #tpu.memory_space<vmem>>, vector<1x256xf32>
    %31 = vector.broadcast %30 : vector<1x256xf32> to vector<8x256xf32>
    %32 = arith.mulf %29, %31 : vector<8x256xf32>
    %c1 = arith.constant 1 : index
    %c0_18 = arith.constant 0 : index
    %33 = vector.load %arg12[%c1, %c0_18] : memref<9x256xf32, #tpu.memory_space<vmem>>, vector<1x256xf32>
    %34 = vector.broadcast %33 : vector<1x256xf32> to vector<8x256xf32>
    %35 = arith.mulf %28, %34 : vector<8x256xf32>
    %c255_i32 = arith.constant 255 : i32
    %36 = tpu.dynamic_rotate %28 by %c255_i32 dim 1 : vector<8x256xf32>, i32 -> vector<8x256xf32>
    %c2 = arith.constant 2 : index
    %c0_19 = arith.constant 0 : index
    %37 = vector.load %arg12[%c2, %c0_19] : memref<9x256xf32, #tpu.memory_space<vmem>>, vector<1x256xf32>
    %38 = vector.broadcast %37 : vector<1x256xf32> to vector<8x256xf32>
    %39 = arith.mulf %36, %38 : vector<8x256xf32>
    %c1_i32_20 = arith.constant 1 : i32
    %40 = tpu.dynamic_rotate %27 by %c1_i32_20 dim 1 : vector<8x256xf32>, i32 -> vector<8x256xf32>
    %c3 = arith.constant 3 : index
    %c0_21 = arith.constant 0 : index
    %41 = vector.load %arg12[%c3, %c0_21] : memref<9x256xf32, #tpu.memory_space<vmem>>, vector<1x256xf32>
    %42 = vector.broadcast %41 : vector<1x256xf32> to vector<8x256xf32>
    %43 = arith.mulf %40, %42 : vector<8x256xf32>
    %c255_i32_22 = arith.constant 255 : i32
    %44 = tpu.dynamic_rotate %27 by %c255_i32_22 dim 1 : vector<8x256xf32>, i32 -> vector<8x256xf32>
    %c5 = arith.constant 5 : index
    %c0_23 = arith.constant 0 : index
    %45 = vector.load %arg12[%c5, %c0_23] : memref<9x256xf32, #tpu.memory_space<vmem>>, vector<1x256xf32>
    %46 = vector.broadcast %45 : vector<1x256xf32> to vector<8x256xf32>
    %47 = arith.mulf %44, %46 : vector<8x256xf32>
    %c240_i32 = arith.constant 240 : i32
    %48 = tpu.dynamic_rotate %27 by %c240_i32 dim 1 : vector<8x256xf32>, i32 -> vector<8x256xf32>
    %c1_i32_24 = arith.constant 1 : i32
    %49 = tpu.dynamic_rotate %48 by %c1_i32_24 dim 1 : vector<8x256xf32>, i32 -> vector<8x256xf32>
    %c6 = arith.constant 6 : index
    %c0_25 = arith.constant 0 : index
    %50 = vector.load %arg12[%c6, %c0_25] : memref<9x256xf32, #tpu.memory_space<vmem>>, vector<1x256xf32>
    %51 = vector.broadcast %50 : vector<1x256xf32> to vector<8x256xf32>
    %52 = arith.mulf %49, %51 : vector<8x256xf32>
    %c7 = arith.constant 7 : index
    %c0_26 = arith.constant 0 : index
    %53 = vector.load %arg12[%c7, %c0_26] : memref<9x256xf32, #tpu.memory_space<vmem>>, vector<1x256xf32>
    %54 = vector.broadcast %53 : vector<1x256xf32> to vector<8x256xf32>
    %55 = arith.mulf %48, %54 : vector<8x256xf32>
    %c255_i32_27 = arith.constant 255 : i32
    %56 = tpu.dynamic_rotate %48 by %c255_i32_27 dim 1 : vector<8x256xf32>, i32 -> vector<8x256xf32>
    %c8 = arith.constant 8 : index
    %c0_28 = arith.constant 0 : index
    %57 = vector.load %arg12[%c8, %c0_28] : memref<9x256xf32, #tpu.memory_space<vmem>>, vector<1x256xf32>
    %58 = vector.broadcast %57 : vector<1x256xf32> to vector<8x256xf32>
    %59 = arith.mulf %56, %58 : vector<8x256xf32>
    %60 = tpu.concatenate %32, %35, %39, %43, %27, %47, %52, %55, %59 in 0 : vector<8x256xf32>, vector<8x256xf32>, vector<8x256xf32>, vector<8x256xf32>, vector<8x256xf32>, vector<8x256xf32>, vector<8x256xf32>, vector<8x256xf32>, vector<8x256xf32> -> vector<72x256xf32>
    %61 = arith.truncf %60 : vector<72x256xf32> to vector<72x256xbf16>
    %c0_29 = arith.constant 0 : index
    %c0_30 = arith.constant 0 : index
    %62 = vector.load %arg3[%c0_29, %c0_30] : memref<8x72xbf16, #tpu.memory_space<vmem>>, vector<8x72xbf16>
    %cst_31 = arith.constant dense<0.000000e+00> : vector<8x256xf32>
    %63 = tpu.matmul %62, %61, %cst_31 {dimension_numbers = #tpu.dot_dimension_numbers<[1], [0], [0], [1], [0, 0, 1, 1], [], []>} : vector<8x72xbf16>, vector<72x256xbf16>, vector<8x256xf32> -> vector<8x256xf32>
    %cst_32 = arith.constant dense<0.000000e+00> : vector<8xf32>
    %64 = vector.multi_reduction <add>, %63, %cst_32 [1] : vector<8x256xf32> to vector<8xf32>
    %65 = vector.shape_cast %64 : vector<8xf32> to vector<8x1xf32>
    %cst_33 = arith.constant dense<0.000000e+00> : vector<8x1xf32>
    %66 = tpu.matmul %2, %65, %cst_33 {dimension_numbers = #tpu.dot_dimension_numbers<[1], [0], [0], [1], [0, 0, 1, 1], [], []>} : vector<8x8xf32>, vector<8x1xf32>, vector<8x1xf32> -> vector<8x1xf32>
    %67 = vector.broadcast %66 : vector<8x1xf32> to vector<8x256xf32>
    %68 = arith.subf %63, %67 : vector<8x256xf32>
    %69 = arith.mulf %68, %68 : vector<8x256xf32>
    %cst_34 = arith.constant dense<0.000000e+00> : vector<8xf32>
    %70 = vector.multi_reduction <add>, %69, %cst_34 [1] : vector<8x256xf32> to vector<8xf32>
    %71 = vector.shape_cast %70 : vector<8xf32> to vector<8x1xf32>
    %cst_35 = arith.constant dense<0.000000e+00> : vector<8x1xf32>
    %72 = tpu.matmul %2, %71, %cst_35 {dimension_numbers = #tpu.dot_dimension_numbers<[1], [0], [0], [1], [0, 0, 1, 1], [], []>} : vector<8x8xf32>, vector<8x1xf32>, vector<8x1xf32> -> vector<8x1xf32>
    %cst_36 = arith.constant 9.99999974E-6 : f32
    %73 = vector.broadcast %cst_36 : f32 to vector<8x1xf32>
    %74 = arith.addf %72, %73 : vector<8x1xf32>
    %75 = math.rsqrt %74 : vector<8x1xf32>
    %76 = vector.broadcast %75 : vector<8x1xf32> to vector<8x256xf32>
    %77 = arith.mulf %68, %76 : vector<8x256xf32>
    %c0_37 = arith.constant 0 : index
    %c0_38 = arith.constant 0 : index
    %78 = vector.load %arg7[%c0_37, %c0_38] : memref<8x1xf32, #tpu.memory_space<vmem>>, vector<8x1xf32>
    %79 = vector.broadcast %78 : vector<8x1xf32> to vector<8x256xf32>
    %80 = arith.mulf %77, %79 : vector<8x256xf32>
    %c0_39 = arith.constant 0 : index
    %c0_40 = arith.constant 0 : index
    %81 = vector.load %arg8[%c0_39, %c0_40] : memref<8x1xf32, #tpu.memory_space<vmem>>, vector<8x1xf32>
    %82 = vector.broadcast %81 : vector<8x1xf32> to vector<8x256xf32>
    %83 = arith.addf %80, %82 : vector<8x256xf32>
    %cst_41 = arith.constant 0.000000e+00 : f32
    %84 = vector.broadcast %cst_41 : f32 to vector<8x256xf32>
    %85 = arith.maximumf %83, %84 : vector<8x256xf32>
    %c0_42 = arith.constant 0 : index
    %c0_43 = arith.constant 0 : index
    %86 = vector.load %arg4[%c0_42, %c0_43] : memref<8x8xbf16, #tpu.memory_space<vmem>>, vector<8x8xbf16>
    %87 = arith.truncf %85 : vector<8x256xf32> to vector<8x256xbf16>
    %cst_44 = arith.constant dense<0.000000e+00> : vector<8x256xf32>
    %88 = tpu.matmul %86, %87, %cst_44 {dimension_numbers = #tpu.dot_dimension_numbers<[1], [0], [0], [1], [0, 0, 1, 1], [], []>} : vector<8x8xbf16>, vector<8x256xbf16>, vector<8x256xf32> -> vector<8x256xf32>
    %cst_45 = arith.constant dense<0.000000e+00> : vector<8xf32>
    %89 = vector.multi_reduction <add>, %88, %cst_45 [1] : vector<8x256xf32> to vector<8xf32>
    %90 = vector.shape_cast %89 : vector<8xf32> to vector<8x1xf32>
    %cst_46 = arith.constant dense<0.000000e+00> : vector<8x1xf32>
    %91 = tpu.matmul %2, %90, %cst_46 {dimension_numbers = #tpu.dot_dimension_numbers<[1], [0], [0], [1], [0, 0, 1, 1], [], []>} : vector<8x8xf32>, vector<8x1xf32>, vector<8x1xf32> -> vector<8x1xf32>
    %92 = vector.broadcast %91 : vector<8x1xf32> to vector<8x256xf32>
    %93 = arith.subf %88, %92 : vector<8x256xf32>
    %94 = arith.mulf %93, %93 : vector<8x256xf32>
    %cst_47 = arith.constant dense<0.000000e+00> : vector<8xf32>
    %95 = vector.multi_reduction <add>, %94, %cst_47 [1] : vector<8x256xf32> to vector<8xf32>
    %96 = vector.shape_cast %95 : vector<8xf32> to vector<8x1xf32>
    %cst_48 = arith.constant dense<0.000000e+00> : vector<8x1xf32>
    %97 = tpu.matmul %2, %96, %cst_48 {dimension_numbers = #tpu.dot_dimension_numbers<[1], [0], [0], [1], [0, 0, 1, 1], [], []>} : vector<8x8xf32>, vector<8x1xf32>, vector<8x1xf32> -> vector<8x1xf32>
    %cst_49 = arith.constant 9.99999974E-6 : f32
    %98 = vector.broadcast %cst_49 : f32 to vector<8x1xf32>
    %99 = arith.addf %97, %98 : vector<8x1xf32>
    %100 = math.rsqrt %99 : vector<8x1xf32>
    %101 = vector.broadcast %100 : vector<8x1xf32> to vector<8x256xf32>
    %102 = arith.mulf %93, %101 : vector<8x256xf32>
    %c0_50 = arith.constant 0 : index
    %c0_51 = arith.constant 0 : index
    %103 = vector.load %arg9[%c0_50, %c0_51] : memref<8x1xf32, #tpu.memory_space<vmem>>, vector<8x1xf32>
    %104 = vector.broadcast %103 : vector<8x1xf32> to vector<8x256xf32>
    %105 = arith.mulf %102, %104 : vector<8x256xf32>
    %c0_52 = arith.constant 0 : index
    %c0_53 = arith.constant 0 : index
    %106 = vector.load %arg10[%c0_52, %c0_53] : memref<8x1xf32, #tpu.memory_space<vmem>>, vector<8x1xf32>
    %107 = vector.broadcast %106 : vector<8x1xf32> to vector<8x256xf32>
    %108 = arith.addf %105, %107 : vector<8x256xf32>
    %109 = arith.addf %108, %1 : vector<8x256xf32>
    %cst_54 = arith.constant 0.000000e+00 : f32
    %110 = vector.broadcast %cst_54 : f32 to vector<8x256xf32>
    %111 = arith.maximumf %109, %110 : vector<8x256xf32>
    %c0_55 = arith.constant 0 : index
    %c0_56 = arith.constant 0 : index
    %c0_57 = arith.constant 0 : index
    %112 = vector.load %arg13[%c0_55, %c0_56, %c0_57] : memref<1x8x256xf32, #tpu.memory_space<vmem>>, vector<1x8x256xf32>
    %113 = vector.shape_cast %112 : vector<1x8x256xf32> to vector<8x256xf32>
    %114 = vector.shape_cast %111 : vector<8x256xf32> to vector<1x8x256xf32>
    tpu.vector_store %arg13[%c0_55, %c0_56, %c0_57], %114 {strides = array<i32>} : memref<1x8x256xf32, #tpu.memory_space<vmem>>, vector<1x8x256xf32>,
    return
  }
  func.func @transform_0(%arg0: i32) -> (i32, i32, i32) {
    %c0_i32 = arith.constant 0 : i32
    %c0_i32_0 = arith.constant 0 : i32
    %c0_i32_1 = arith.constant 0 : i32
    return %arg0, %c0_i32, %c0_i32_0 : i32, i32, i32
  }
  func.func @transform_1(%arg0: i32) -> (i32, i32) {
    %c0_i32 = arith.constant 0 : i32
    %c0_i32_0 = arith.constant 0 : i32
    %c0_i32_1 = arith.constant 0 : i32
    return %c0_i32, %c0_i32_0 : i32, i32
  }
  func.func @transform_2(%arg0: i32) -> (i32, i32) {
    %c0_i32 = arith.constant 0 : i32
    %c0_i32_0 = arith.constant 0 : i32
    %c0_i32_1 = arith.constant 0 : i32
    return %c0_i32, %c0_i32_0 : i32, i32
  }
  func.func @transform_3(%arg0: i32) -> (i32, i32) {
    %c0_i32 = arith.constant 0 : i32
    %c0_i32_0 = arith.constant 0 : i32
    %c0_i32_1 = arith.constant 0 : i32
    return %c0_i32, %c0_i32_0 : i32, i32
  }
  func.func @transform_4(%arg0: i32) -> (i32, i32) {
    %c0_i32 = arith.constant 0 : i32
    %c0_i32_0 = arith.constant 0 : i32
    %c0_i32_1 = arith.constant 0 : i32
    return %c0_i32, %c0_i32_0 : i32, i32
  }
  func.func @transform_5(%arg0: i32) -> (i32, i32) {
    %c0_i32 = arith.constant 0 : i32
    %c0_i32_0 = arith.constant 0 : i32
    %c0_i32_1 = arith.constant 0 : i32
    return %c0_i32, %c0_i32_0 : i32, i32
  }
  func.func @transform_6(%arg0: i32) -> (i32, i32) {
    %c0_i32 = arith.constant 0 : i32
    %c0_i32_0 = arith.constant 0 : i32
    %c0_i32_1 = arith.constant 0 : i32
    return %c0_i32, %c0_i32_0 : i32, i32
  }
  func.func @transform_7(%arg0: i32) -> (i32, i32) {
    %c0_i32 = arith.constant 0 : i32
    %c0_i32_0 = arith.constant 0 : i32
    %c0_i32_1 = arith.constant 0 : i32
    return %c0_i32, %c0_i32_0 : i32, i32
  }
  func.func @transform_8(%arg0: i32) -> (i32, i32) {
    %c0_i32 = arith.constant 0 : i32
    %c0_i32_0 = arith.constant 0 : i32
    %c0_i32_1 = arith.constant 0 : i32
    return %c0_i32, %c0_i32_0 : i32, i32
  }
  func.func @transform_9(%arg0: i32) -> (i32, i32) {
    %c0_i32 = arith.constant 0 : i32
    %c0_i32_0 = arith.constant 0 : i32
    %c0_i32_1 = arith.constant 0 : i32
    return %c0_i32, %c0_i32_0 : i32, i32
  }
  func.func @transform_10(%arg0: i32) -> (i32, i32) {
    %c0_i32 = arith.constant 0 : i32
    %c0_i32_0 = arith.constant 0 : i32
    %c0_i32_1 = arith.constant 0 : i32
    return %c0_i32, %c0_i32_0 : i32, i32
  }
  func.func @transform_11(%arg0: i32) -> (i32, i32) {
    %c0_i32 = arith.constant 0 : i32
    %c0_i32_0 = arith.constant 0 : i32
    %c0_i32_1 = arith.constant 0 : i32
    return %c0_i32, %c0_i32_0 : i32, i32
  }
  func.func @transform_12(%arg0: i32) -> (i32, i32, i32) {
    %c0_i32 = arith.constant 0 : i32
    %c0_i32_0 = arith.constant 0 : i32
    %c0_i32_1 = arith.constant 0 : i32
    return %arg0, %c0_i32, %c0_i32_0 : i32, i32, i32
  }
}

</mosaic_0001>

<bundles_post_ra>
// kernel: tpu_custom_call.1
= control target key start
LH: loop header
LB: loop body
LE: loop exit
PB: predicated region body
PF: predicated region fallthrough
CT: control target
= control target key end

     0   :  { %17 = vsyncpa [#allocation3], 0  ;;  %s2223_s0 = inlined_call_operand.vmem [shape: f32[2,8,256], index: 0, kind: input, shape index: {}]   ;;  %s2224_s1 = inlined_call_operand.hbm [shape: bf16[8,8], index: 1, kind: input, shape index: {}]   ;;  %s2225_s2 = inlined_call_operand.hbm [shape: bf16[8,72], index: 2, kind: input, shape index: {}]   ;;  %s2226_s3 = inlined_call_operand.hbm [shape: bf16[8,8], index: 3, kind: input, shape index: {}]   ;;  %s2227_s4 = inlined_call_operand.vmem [shape: f32[8,1], index: 4, kind: input, shape index: {}]   ;;  %s2228_s5 = inlined_call_operand.vmem [shape: f32[8,1], index: 5, kind: input, shape index: {}]   ;;  %s2229_s6 = inlined_call_operand.vmem [shape: f32[8,1], index: 6, kind: input, shape index: {}]   ;;  %s2230_s7 = inlined_call_operand.vmem [shape: f32[8,1], index: 7, kind: input, shape index: {}]   ;;  %s2231_s8 = inlined_call_operand.vmem [shape: f32[8,1], index: 8, kind: input, shape index: {}]   ;;  %s2232_s9 = inlined_call_operand.vmem [shape: f32[8,1], index: 9, kind: input, shape index: {}]   ;;  %s2233_s10 = inlined_call_operand.vmem [shape: f32[8,8], index: 10, kind: input, shape index: {}]   ;;  %s2234_s11 = inlined_call_operand.vmem [shape: f32[9,256], index: 11, kind: input, shape index: {}]   ;;  %s2235_s12 = inlined_call_operand.hbm [shape: f32[2,8,256], index: 12, kind: output, shape index: {}]  }
   0x1   :  { %18 = vsyncpa [#allocation6], 0 }
   0x2   :  { %19 = vsyncpa [#allocation4], 0 }
   0x3   :  { %21 = vsyncpa [#allocation4 + $0x1], 0  ;;  %s1850_s21 = smov 0   ;;  %s1852_s22 = smov 0  }
   0x4   :  { %s1854_s23 = smov 0   ;;  %s1856_s24 = smov 0  }
   0x5 LB: > { %2245 = sst [smem:[#allocation12_spill]] %s1760_s21  ;;  %s1871_s25 = sadd.s32 4294967295, %s1772_s24   ;;  %s1772_s24 = sphi %s1856_s24, %s2266_s24   ;;  %s1768_s23 = sphi %s1854_s23, %s2271_s23   ;;  %s1764_s22 = sphi %s1852_s22, %s2270_s22   ;;  %s1760_s21 = sphi %s1850_s21, %s2269_s21  }
   0x6   : > { %2246 = sst [smem:[#allocation13_spill]] %s1768_s23  ;;  %s1452_s26 = sadd.s32 4294967294, %s1772_s24  }
   0x7   : > { %2247 = sst [smem:[#allocation14_spill]] %s1772_s24  ;;  %s1875_s27 = sadd.s32 1, %s1772_s24  }
   0x8   : > { %2248 = sst [smem:[#allocation15_spill]] %s1875_s27  ;;  %s291_s28 = sadd.s32 1, %s1768_s23 }
   0x9   : > { %s288_s29 = ssub.s32 %s1772_s24, %s1875_s27  ;;  %p301_p0 = scmp.ne.s32.totalorder %s1768_s23, %s1764_s22 }
   0xa   : > { %p289_p1 = scmp.eq.s32.totalorder %s288_s29, 0  ;;  %p302_p2 = scmp.eq.s32.totalorder %s1871_s25, 1 }
   0xb   : > { %p307_p3 = scmp.ne.s32.totalorder %s1764_s22, %s1760_s21  ;;  %p308_p4 = scmp.eq.s32.totalorder %s1452_s26, 1 }
   0xc   : > { %s1886_s30 = scalar_select %p289_p1, %s1768_s23, %s291_s28  }
   0xd   : > { %p1888_p5 = por %p302_p2, %p301_p0  ;;  %p1892_p6 = por %p308_p4, %p307_p3 }
   0xe   : > { %2249 = sst [smem:[#allocation16_spill]] %s1886_s30  ;;  %p1453_p7 = scmp.ge.s32.totalorder %s1772_s24, 1 }
   0xf   : > { %s2250_s13 = scalar_select %p1888_p5, 1, 0 }
  0x10   : > { %s2251_s14 = scalar_select %p1892_p6, 1, 0 }
  0x11   : > { %p315_p8 = scmp.lt.s32.totalorder %s1772_s24, 3  ;;  %p2240_p9 = scmp.eq.s32.totalorder %s1871_s25, 0 }
  0x12   : > { %2252 = sst [smem:[#allocation17_spill]] %s2251_s14  ;;  %s1774_s16 = smov [#allocation5]  }
  0x13   : > { %p1899_p10 = pnand %p1453_p7, %p315_p8  ;;  %s339_s17 = sshll.u32 %s1774_s16, 4  ;;  %s340_s17 = int_to_ptr.vmem [resolvable:$true] %s339_s17 }
  0x14   : > { %s1775_s18 = smov [#allocation2]   ;;  %s1776_s26 = smov [#allocation7]  }
  0x15   : > { %s2253_s15 = scalar_select %p1899_p10, 1, 0 }
  0x16   : > { %p1547_p11 = pneg %p1899_p10  ;;  %s328_s19 = sshll.u32 %s1775_s18, 4  ;;  %s1911_s19 = int_to_ptr.vmem [resolvable:$true] %s328_s19 }
  0x17   : > { %s350_s28 = sshll.u32 %s1776_s26, 4  ;;  %s1618_s16 = scalar_lea.hbm %s2225_s2, 64  ;;  %s1913_s28 = int_to_ptr.vmem [resolvable:$true] %s350_s28 }
  0x18   : > { %p1907_p12 = pnand %p2240_p9, %p1547_p11  ;;  %p1619_p13 = scmp.ne.s32.totalorder %s2225_s2, %s1618_s16 }
  0x19   : > { %p1625_p3 = scmp.lt.u32.totalorder %s1618_s16, %s2225_s2 }
  0x1a   : > { %p1923_p0 = pneg %p1907_p12 }
  0x1c   : > { %p1621_p1 = pnand %p1923_p0, %p1619_p13 }
  0x1e   : > { %p1622_p2 = pneg %p1621_p1 }
  0x20   : > { %p1627_p4 = pnand %p1625_p3, %p1622_p2 }
  0x22   : > { %1630 = shalt.err (!%p1627_p4)
}
  0x23   : > { %s1631_s30 = scalar_lea.vmem %s340_s17, 64  ;;  %p1639_p9 = scmp.lt.s32.totalorder %s340_s17, %s340_s17 }
  0x24   : > { %p1632_p7 = scmp.ne.s32.totalorder %s340_s17, %s1631_s30  ;;  %p1640_p6 = scmp.lt.s32.totalorder %s1631_s30, %s1631_s30 }
  0x26   : > { %p1634_p8 = pnand %p1632_p7, %p1923_p0  ;;  %p1641_p5 = por %p1640_p6, %p1639_p9 }
  0x28   : > { %p1635_p11 = pneg %p1634_p8 }
  0x2a   : > { %p1642_p10 = pnand %p1641_p5, %p1635_p11 }
  0x2c   : > { %1645 = shalt.err (!%p1642_p10)
}
  0x2d   : > { %1553 = dma.hbm_to_vmem [thread:$0]  (!%p1907_p12), %s2225_s2, 64, %s340_s17, [#allocation6]  }
  0x2e   : > { %s1646_s16 = scalar_lea.hbm %s2224_s1, 64 }
  0x2f   : > { %p1647_p13 = scmp.ne.s32.totalorder %s2224_s1, %s1646_s16  ;;  %p1653_p5 = scmp.lt.u32.totalorder %s1646_s16, %s2224_s1 }
  0x31   : > { %p1649_p1 = pnand %p1647_p13, %p1923_p0 }
  0x33   : > { %p1650_p6 = pneg %p1649_p1 }
  0x35   : > { %p1655_p9 = pnand %p1653_p5, %p1650_p6 }
  0x37   : > { %1658 = shalt.err (!%p1655_p9)
}
  0x38   : > { %s1659_s17 = scalar_lea.vmem %s1911_s19, 64  ;;  %p1667_p4 = scmp.lt.s32.totalorder %s1911_s19, %s1911_s19 }
  0x39   : > { %p1660_p10 = scmp.ne.s32.totalorder %s1911_s19, %s1659_s17  ;;  %p1668_p7 = scmp.lt.s32.totalorder %s1659_s17, %s1659_s17 }
  0x3b   : > { %p1662_p2 = pnand %p1660_p10, %p1923_p0  ;;  %p1669_p8 = por %p1668_p7, %p1667_p4 }
  0x3d   : > { %p1663_p3 = pneg %p1662_p2 }
  0x3f   : > { %p1670_p11 = pnand %p1669_p8, %p1663_p3 }
  0x41   : > { %1673 = shalt.err (!%p1670_p11)
}
  0x42   : > { %1550 = dma.hbm_to_vmem [thread:$0]  (!%p1907_p12), %s2224_s1, 64, %s1911_s19, [#allocation3]  }
  0x43   : > { %s1674_s14 = scalar_lea.hbm %s2226_s3, 64 }
  0x44   : > { %p1675_p13 = scmp.ne.s32.totalorder %s2226_s3, %s1674_s14  ;;  %p1681_p5 = scmp.lt.u32.totalorder %s1674_s14, %s2226_s3 }
  0x46   : > { %p1677_p1 = pnand %p1675_p13, %p1923_p0 }
  0x48   : > { %p1678_p6 = pneg %p1677_p1 }
  0x4a   : > { %p1683_p9 = pnand %p1681_p5, %p1678_p6 }
  0x4c   : > { %1686 = shalt.err (!%p1683_p9)
}
  0x4d   : > { %s1687_s19 = scalar_lea.vmem %s1913_s28, 64  ;;  %p1695_p4 = scmp.lt.s32.totalorder %s1913_s28, %s1913_s28 }
  0x4e   : > { %p1688_p10 = scmp.ne.s32.totalorder %s1913_s28, %s1687_s19  ;;  %p1696_p7 = scmp.lt.s32.totalorder %s1687_s19, %s1687_s19 }
  0x50   : > { %p1690_p2 = pnand %p1688_p10, %p1923_p0  ;;  %p1697_p8 = por %p1696_p7, %p1695_p4 }
  0x52   : > { %p1691_p3 = pneg %p1690_p2 }
  0x54   : > { %p1698_p11 = pnand %p1697_p8, %p1691_p3 }
  0x56   : > { %1701 = shalt.err (!%p1698_p11)
}
  0x57   : > { %1556 = dma.hbm_to_vmem [thread:$0]  (!%p1907_p12), %s2226_s3, 64, %s1913_s28, [#allocation6]  }
  0x58   : > { %p2256_p13 = scmp.ne.s32.totalorder %s2253_s15, 0 }
  0x59   : > { %p2257_p1 = scmp.eq.s32.totalorder (!%p2256_p13), %s1871_s25, 0 }
  0x5a   : > { %395 = sbr.rel (%p2256_p13) target bundleno = 4021 (0xfb5), region = 68 }
  0x61   : > { %1747 = dma.done.wait (%p2257_p1), [#allocation3], 64   ;;  %p2258_p0 = pmov %p2257_p1 }
  0x63   : > { %1749 = vsyncadd (%p2258_p0), [#allocation3], 4294967232  ;;  %p2259_p6 = pmov %p2258_p0 }
  0x64   : > { %p2260_p5 = pmov %p2258_p0 }
  0x65   : > { %1751 = dma.done.wait (%p2259_p6), [#allocation6], 128  }
  0x66   : > { %1753 = vsyncadd (%p2260_p5), [#allocation6], 4294967168  ;;  %p445_p9 = scmp.lt.s32.totalorder %s1871_s25, 1  ;;  %v1777_v0 = vmov 0   ;;  %vm461_vm0 = vcmask 1043456   ;;  %vm457_vm1 = vcmask 64512   ;;  %v697_v41 = vlaneseq }
  0x67   : > { %500 = vmatprep.mubr.bf16.mxu0 %v1777_v0  ;;  %1610 = vset.pattern.permute.xlu0 %v1777_v0  ;;  %v454_v6 = vld [vmem:[#allocation2] sm:$0xf]  ;;  %v1778_v7 = vmov 0.0   ;;  %vm1779_vm2 = vmmov 0   ;;  %s1780_s30 = smov 1   ;;  %s1781_s19 = smov 16  }
  0x68   : > { %s446_s15 = scalar_select %p445_p9, %s1871_s25, 1  ;;  %1611 = vset.pattern.permute.xlu1 %v1777_v0  ;;  %1503 = vmatprep.subr.mxu1 %v1778_v7  ;;  %v2021_v13 = vld [vmem:[%s2233_s10] sm:$0xff]  ;;  %v712_v42 = vshrl.u32 %v697_v41, 7  ;;  %v2051_v43 = vand.u32 127, %v697_v41  ;;  %vm877_vm7 = vcmask 588800  }
  0x69   : > { %1505 = vmatprep.mubr.msk.f32.mxu1 %vm1779_vm2, %v1778_v7  ;;  %v675_v24 = vld [vmem:[%s2227_s4] sm:$0xff]  ;;  %s1782_s17 = smov 112   ;;  %s1783_s18 = smov 127  }
  0x6a   : > { %s1489_s20 = sshll.u32 %s446_s15, 4  ;;  %v683_v29 = vld [vmem:[%s2228_s5] sm:$0xff]  ;;  %v2053_v44 = vsub.s32 0, %v712_v42  ;;  %v2055_v45 = vsub.s32 1, %v712_v42  ;;  %vm699_vm3 = vcmp.lt.s32.totalorder %v2051_v43, 16  ;;  %vm806_vm4 = vcmp.lt.s32.totalorder %v2051_v43, 112 }
  0x6b   : > { %s449_s24 = scalar_lea.vmem %s2223_s0, %s1489_s20  ;;  %v1469_v46 = vld [vmem:[%s2234_s11 + $0x1] ss:$8 sm:$0x3]  ;;  %v1474_v55 = vld [vmem:[%s2234_s11 + $0x7] ss:$8 sm:$0x3] }
  0x6c   : > { %v2003_v1 = vld [vmem:[%s449_s24 + $0x8] sm:$0xff]  ;;  %v2005_v2 = vld [vmem:[%s449_s24] sm:$0xff]  ;;  %v729_v48 = vrot.slane %v1469_v46, %v2053_v44  ;;  %v733_v49 = vrot.slane %v1469_v46, %v2055_v45  ;;  %v840_v57 = vrot.slane %v1474_v55, %v2055_v45  ;;  %v836_v58 = vrot.slane %v1474_v55, %v2053_v44  ;;  %s442_s16 = sand.u32 1, %s1764_s22   ;;  %p2261_p10 = scmp.ne.s32.totalorder %s2250_s13, 0 }
  0x6d   : > { %v456_v3 = vpack.c.bf16 %v2003_v1, %v2003_v1  ;;  %v455_v4 = vpack.c.bf16 %v2005_v2, %v2005_v2  ;;  %vm706_vm5 = vcmp.lt.s32.totalorder %v2051_v43, 1  ;;  %vm742_vm6 = vcmp.lt.s32.totalorder %v2051_v43, 127  ;;  %s1462_s26 = sshll.u32 %s442_s16, 4 }
  0x6f   : > { %1465 = vmatprep.subr.msk.bf16.mxu0 %vm461_vm0, %v456_v3  ;;  %v463_v5 = vsel %vm461_vm0, %v455_v4, 0  ;;  %v709_v3 = vld [vmem:[%s2234_s11] ss:$8 sm:$0x3] }
  0x70   : > { %469 = vmatpush1.bf16.msra.mxu0 %v463_v5 }
  0x73   : > { %1466 = vmatmul.mubr.msk.bf16.vlgmr.msra.gmra.mrb[0].mxu0 %vm457_vm1, %v454_v6  ;;  %v1471_v6 = vld [vmem:[%s2234_s11 + $0x3] ss:$8 sm:$0x3] }
  0x74   : > { %919 = vmatprep.mubr.bf16.mxu0 %v1777_v0 }
 0x146   : > { %v502_v8 = vpop.f32.mrb[0].mxu0 }
 0x147   : > { %v504_v9 = vpop.f32.mrb[1].mxu0 }
 0x148   : > { %v506_v10 = vpop.f32.mrb[2].mxu0  ;;  %v509_v11 = vadd.f32 %v504_v9, %v502_v8 }
 0x149   : > { %v507_v12 = vpop.f32.mrb[3].mxu0  ;;  %v1470_v10 = vld [vmem:[%s2234_s11 + $0x2] ss:$8 sm:$0x3] }
 0x14a   : > { %510 = vadd.xlane.f32.xlu0 %v509_v11  ;;  %v772_v11 = vrot.slane %v1471_v6, %v2053_v44 }
 0x1d7   : > { %v511_v14 = vpop.xlane.xlu0 %510 }
 0x1d8   : > { %1504 = vmatpush3.msra.mxu1 %v511_v14 }
 0x1d9   : > { %1506 = vmatmul.mubr.msk.f32.vlgmr.msra.gmra.mrb[0].mxu1 %vm457_vm1, %v2021_v13  ;;  %1508 = vmatprep.subr.mxu1 %v1778_v7 }
 0x1da   : > { %1510 = vmatprep.mubr.msk.f32.mxu1 %vm1779_vm2, %v1778_v7 }
 0x2ac   : > { %v581_v15 = vpop.f32.mrb[0].mxu1 }
 0x2ad   : > { %587 = vperm.xlu0 %1610, %v581_v15   ;;  %v1507_v16 = vpop.f32.mrb[1].mxu1  ;;  %v776_v15 = vrot.slane %v1471_v6, %v2055_v45 }
 0x32c   : > { %v588_v17 = vpop.permute.xlu0 %587 }
 0x32d   : > { %v590_v18 = vsub.f32 %v502_v8, %v588_v17  ;;  %v591_v19 = vsub.f32 %v504_v9, %v588_v17  ;;  %v714_v8 = vrot.slane %v709_v3, %v2053_v44  ;;  %v718_v9 = vrot.slane %v709_v3, %v2055_v45 }
 0x32f   : > { %v592_v20 = vmul.f32 %v590_v18, %v590_v18  ;;  %v593_v21 = vmul.f32 %v591_v19, %v591_v19 }
 0x331   : > { %v594_v22 = vadd.f32 %v593_v21, %v592_v20  ;;  %v751_v20 = vrot.slane %v1470_v10, %v2053_v44  ;;  %v755_v21 = vrot.slane %v1470_v10, %v2055_v45 }
 0x333   : > { %595 = vadd.xlane.f32.xlu1 %v594_v22  ;;  %v1472_v22 = vld [vmem:[%s2234_s11 + $0x5] ss:$8 sm:$0x3] }
 0x344   : > { %678 = vperm.xlu1 %1611, %v675_v24  }
 0x3c0   : > { %v596_v23 = vpop.xlane.xlu1 %595 }
 0x3c1   : > { %1509 = vmatpush3.msra.mxu1 %v596_v23 }
 0x3c2   : > { %1511 = vmatmul.mubr.msk.f32.vlgmr.msra.gmra.mrb[2].mxu1 %vm457_vm1, %v2021_v13  ;;  %1513 = vmatprep.subr.mxu1 %v1778_v7 }
 0x3c3   : > { %1515 = vmatprep.mubr.msk.f32.mxu1 %vm1779_vm2, %v1778_v7 }
 0x3c4   : > { %v679_v30 = vpop.permute.xlu1 %678 }
 0x495   : > { %v663_v25 = vpop.f32.mrb[2].mxu1 }
 0x496   : > { %v664_v26 = vadd.f32 1e-05, %v663_v25  ;;  %v1512_v27 = vpop.f32.mrb[3].mxu1 }
 0x498   : > { %1612 = vrsqrt.f32 %v664_v26 }
 0x4a2   : > { %v1613_v28 = vpop.eup %1612 }
 0x4a3   : > { %670 = vperm.xlu1 %1611, %v1613_v28  }
 0x4a7   : > { %686 = vperm.xlu1 %1611, %v683_v29  }
 0x522   : > { %v671_v31 = vpop.permute.xlu1 %670 }
 0x523   : > { %v673_v32 = vmul.f32 %v671_v31, %v590_v18  ;;  %v674_v33 = vmul.f32 %v671_v31, %v591_v19  ;;  %v793_v31 = vrot.slane %v1472_v22, %v2053_v44 }
 0x525   : > { %v681_v34 = vmul.f32 %v679_v30, %v673_v32  ;;  %v682_v35 = vmul.f32 %v679_v30, %v674_v33  ;;  %v797_v32 = vrot.slane %v1472_v22, %v2055_v45 }
 0x526   : > { %v687_v36 = vpop.permute.xlu1 %686 }
 0x527   : > { %v689_v37 = vadd.f32 %v687_v36, %v681_v34  ;;  %v690_v38 = vadd.f32 %v687_v36, %v682_v35 }
 0x529   : > { %v2039_v39 = vmax.f32 %v689_v37, 0.0  ;;  %v2041_v40 = vmax.f32 %v690_v38, 0.0  ;;  %v1473_v37 = vld [vmem:[%s2234_s11 + $0x6] ss:$8 sm:$0x3] }
 0x52b   : > { %762 = vrot.lane.b32.xlu0 %v2041_v40, %s1780_s30  ;;  %693 = vrot.lane.b32.xlu1 %v2039_v39, %s1781_s19 }
 0x52f   : > { %695 = vrot.lane.b32.xlu1 %v2041_v40, %s1781_s19  ;;  %s444_s19 = scalar_lea.vmem [#allocation8], %s1462_s26 }
 0x533   : > { %802 = vrot.lane.b32.xlu1 %v2039_v39, %s1782_s17 }
 0x537   : > { %804 = vrot.lane.b32.xlu1 %v2041_v40, %s1782_s17  ;;  %s1362_s17 = sshll.u32 %s444_s19, 4  ;;  %s2183_s17 = int_to_ptr.vmem [resolvable:$true] %s1362_s17 }
 0x538   : > { %s1702_s28 = scalar_lea.vmem %s2183_s17, 256 }
 0x539   : > { %p1703_p12 = scmp.ne.s32.totalorder %s2183_s17, %s1702_s28 }
 0x53b   : > { %760 = vrot.lane.b32.xlu1 %v2039_v39, %s1780_s30  ;;  %p1704_p2 = pnand %p1703_p12, %p2261_p10 }
 0x53d   : > { %p1705_p3 = pneg %p1704_p2 }
 0x59d   : > { %v694_v47 = vpop.permute.xlu1 %693  ;;  %v763_v4 = vpop.permute.xlu0 %762 }
 0x5a1   : > { %v696_v50 = vpop.permute.xlu1 %695 }
 0x5a2   : > { %v701_v51 = vsel %vm699_vm3, %v696_v50, %v694_v47  ;;  %v700_v52 = vsel %vm699_vm3, %v694_v47, %v696_v50 }
 0x5a3   : > { %702 = vrot.lane.b32.xlu1 %v701_v51, %s1780_s30  ;;  %v736_v53 = vmul.f32 %v729_v48, %v701_v51  ;;  %704 = vrot.lane.b32.xlu0 %v700_v52, %s1780_s30  ;;  %v737_v54 = vmul.f32 %v733_v49, %v700_v52 }
 0x5a5   : > { %v803_v56 = vpop.permute.xlu1 %802 }
 0x5a7   : > { %738 = vrot.lane.b32.xlu1 %v701_v51, %s1783_s18  ;;  %740 = vrot.lane.b32.xlu0 %v700_v52, %s1783_s18  ;;  %v821_v51 = vrot.slane %v1473_v37, %v2053_v44  ;;  %v825_v52 = vrot.slane %v1473_v37, %v2055_v45 }
 0x5a9   : > { %v805_v59 = vpop.permute.xlu1 %804 }
 0x5aa   : > { %v808_v60 = vsel %vm806_vm4, %v805_v59, %v803_v56  ;;  %v807_v61 = vsel %vm806_vm4, %v803_v56, %v805_v59 }
 0x5ab   : > { %781 = vrot.lane.b32.xlu1 %v2039_v39, %s1783_s18  ;;  %783 = vrot.lane.b32.xlu0 %v2041_v40, %s1783_s18  ;;  %v2073_v62 = vmul.f32 %v840_v57, %v808_v60  ;;  %v2075_v63 = vmul.f32 %v836_v58, %v807_v61 }
 0x5ad   : > { %v761_v5 = vpop.permute.xlu1 %760 }
 0x5ae   : > { %v764_v23 = vsel %vm706_vm5, %v761_v5, %v763_v4  ;;  %v765_v24 = vsel %vm706_vm5, %v763_v4, %v761_v5 }
 0x5af   : > { %811 = vrot.lane.b32.xlu0 %v808_v60, %s1780_s30  ;;  %809 = vrot.lane.b32.xlu1 %v807_v61, %s1780_s30  ;;  %v779_v33 = vmul.f32 %v772_v11, %v765_v24  ;;  %v780_v34 = vmul.f32 %v776_v15, %v764_v23  ;;  %s1490_s30 = sshll.u32 %s1871_s25, 8  ;;  %s1348_s25 = scalar_lea.sflag [#allocation4], %s442_s16 }
 0x5b0   : > { %s2181_s20 = scalar_lea.hbm %s2235_s12, %s1490_s30 }
 0x5b3   : > { %847 = vrot.lane.b32.xlu0 %v808_v60, %s1783_s18  ;;  %845 = vrot.lane.b32.xlu1 %v807_v61, %s1783_s18  ;;  %s1784_s18 = smov [#allocation8]  }
 0x5b4   : > { %s1706_s24 = sshll.u32 %s1784_s18, 4  ;;  %s1707_s24 = int_to_ptr.vmem [resolvable:$false] %s1706_s24 }
 0x5b5   : > { %s1708_s23 = scalar_lea.vmem %s1707_s24, 512  ;;  %p1709_p4 = scmp.lt.s32.totalorder %s2183_s17, %s1707_s24 }
 0x5b6   : > { %p1710_p7 = scmp.lt.s32.totalorder %s1708_s23, %s1702_s28 }
 0x5b8   : > { %p1711_p8 = por %p1710_p7, %p1709_p4 }
 0x5ba   : > { %p1712_p11 = pnand %p1711_p8, %p1705_p3 }
 0x615   : > { %v705_v12 = vpop.permute.xlu0 %704  ;;  %v703_v14 = vpop.permute.xlu1 %702 }
 0x616   : > { %v707_v16 = vsel %vm706_vm5, %v703_v14, %v705_v12  ;;  %v708_v17 = vsel %vm706_vm5, %v705_v12, %v703_v14 }
 0x617   : > { %v721_v18 = vmul.f32 %v714_v8, %v708_v17  ;;  %v722_v19 = vmul.f32 %v718_v9, %v707_v16 }
 0x619   : > { %v866_v25 = vpack.c.bf16 %v736_v53, %v721_v18  ;;  %v741_v26 = vpop.permute.xlu0 %740  ;;  %v739_v27 = vpop.permute.xlu1 %738  ;;  %v867_v28 = vpack.c.bf16 %v737_v54, %v722_v19  ;;  %v1475_v53 = vld [vmem:[%s2234_s11 + $0x10] ss:$8 sm:$0x3] }
 0x61a   : > { %v743_v29 = vsel %vm742_vm6, %v739_v27, %v741_v26  ;;  %v744_v30 = vsel %vm742_vm6, %v741_v26, %v739_v27  ;;  %v857_v3 = vrot.slane %v1475_v53, %v2053_v44  ;;  %v861_v4 = vrot.slane %v1475_v53, %v2055_v45  ;;  %v1091_v26 = vld [vmem:[%s2229_s6] sm:$0xff] }
 0x61b   : > { %v758_v35 = vmul.f32 %v751_v20, %v743_v29  ;;  %v759_v36 = vmul.f32 %v755_v21, %v744_v30  ;;  %887 = vmatprep.subr.bf16.mxu0 %v867_v28 }
 0x61c   : > { %888 = vmatpush1.bf16.msra.mxu0 %v866_v25 }
 0x61d   : > { %v868_v38 = vpack.c.bf16 %v779_v33, %v758_v35  ;;  %v784_v41 = vpop.permute.xlu0 %783  ;;  %v782_v42 = vpop.permute.xlu1 %781  ;;  %v869_v46 = vpack.c.bf16 %v780_v34, %v759_v36 }
 0x61e   : > { %v785_v47 = vsel %vm742_vm6, %v782_v42, %v784_v41  ;;  %v786_v48 = vsel %vm742_vm6, %v784_v41, %v782_v42 }
 0x61f   : > { %v800_v49 = vmul.f32 %v793_v31, %v785_v47  ;;  %v801_v50 = vmul.f32 %v797_v32, %v786_v48  ;;  %889 = vmatprep.subr.bf16.mxu0 %v869_v46  ;;  %v1099_v32 = vld [vmem:[%s2230_s7] sm:$0xff] }
 0x620   : > { %890 = vmatpush1.bf16.msra.mxu0 %v868_v38 }
 0x621   : > { %v870_v54 = vpack.c.bf16 %v800_v49, %v2039_v39  ;;  %v812_v55 = vpop.permute.xlu0 %811  ;;  %v810_v56 = vpop.permute.xlu1 %809  ;;  %v871_v57 = vpack.c.bf16 %v801_v50, %v2041_v40 }
 0x622   : > { %v813_v58 = vsel %vm706_vm5, %v810_v56, %v812_v55  ;;  %v814_v59 = vsel %vm706_vm5, %v812_v55, %v810_v56 }
 0x623   : > { %v828_v60 = vmul.f32 %v821_v51, %v814_v59  ;;  %v829_v61 = vmul.f32 %v825_v52, %v813_v58  ;;  %891 = vmatprep.subr.bf16.mxu0 %v871_v57  ;;  %v1109_v51 = vld [vmem:[#allocation7] sm:$0xf] }
 0x624   : > { %892 = vmatpush1.bf16.msra.mxu0 %v870_v54 }
 0x625   : > { %v872_v39 = vpack.c.bf16 %v2075_v63, %v828_v60  ;;  %v848_v5 = vpop.permute.xlu0 %847  ;;  %v846_v6 = vpop.permute.xlu1 %845  ;;  %v873_v40 = vpack.c.bf16 %v2073_v62, %v829_v61  ;;  %v876_v63 = vld [vmem:[#allocation5] sm:$0xf] }
 0x626   : > { %v849_v8 = vsel %vm742_vm6, %v846_v6, %v848_v5  ;;  %v850_v9 = vsel %vm742_vm6, %v848_v5, %v846_v6  ;;  %v1325_v6 = vld [vmem:[%s2231_s8] sm:$0xff] }
 0x627   : > { %v864_v10 = vmul.f32 %v857_v3, %v849_v8  ;;  %v865_v11 = vmul.f32 %v861_v4, %v850_v9  ;;  %893 = vmatprep.subr.bf16.mxu0 %v873_v40 }
 0x628   : > { %894 = vmatpush1.bf16.msra.mxu0 %v872_v39 }
 0x629   : > { %v874_v44 = vpack.c.bf16 %v864_v10, %v864_v10  ;;  %v875_v12 = vpack.c.bf16 %v865_v11, %v865_v11  ;;  %v1333_v11 = vld [vmem:[%s2232_s9] sm:$0xff] }
 0x62b   : > { %1476 = vmatprep.subr.msk.bf16.mxu0 %vm461_vm0, %v875_v12  ;;  %v882_v45 = vsel %vm461_vm0, %v874_v44, 0 }
 0x62c   : > { %896 = vmatpush1.bf16.msra.mxu0 %v882_v45 }
 0x62f   : > { %1477 = vmatmul.mubr.msk.bf16.vlgmr.msra.gmra.mrb[4].mxu0 %vm877_vm7, %v876_v63 }
 0x702   : > { %v921_v62 = vpop.f32.mrb[4].mxu0 }
 0x703   : > { %v923_v14 = vpop.f32.mrb[5].mxu0 }
 0x704   : > { %v925_v15 = vpop.f32.mrb[6].mxu0  ;;  %v928_v16 = vadd.f32 %v923_v14, %v921_v62 }
 0x705   : > { %v926_v43 = vpop.f32.mrb[7].mxu0 }
 0x706   : > { %929 = vadd.xlane.f32.xlu1 %v928_v16 }
 0x793   : > { %v930_v17 = vpop.xlane.xlu1 %929 }
 0x794   : > { %1514 = vmatpush3.msra.mxu1 %v930_v17 }
 0x795   : > { %1516 = vmatmul.mubr.msk.f32.vlgmr.msra.gmra.mrb[4].mxu1 %vm457_vm1, %v2021_v13  ;;  %1518 = vmatprep.subr.mxu1 %v1778_v7 }
 0x796   : > { %1520 = vmatprep.mubr.msk.f32.mxu1 %vm1779_vm2, %v1778_v7 }
 0x868   : > { %v997_v18 = vpop.f32.mrb[4].mxu1 }
 0x869   : > { %1003 = vperm.xlu0 %1610, %v997_v18   ;;  %v1517_v19 = vpop.f32.mrb[5].mxu1 }
 0x8e8   : > { %v1004_v20 = vpop.permute.xlu0 %1003 }
 0x8e9   : > { %v1006_v21 = vsub.f32 %v921_v62, %v1004_v20  ;;  %v1007_v22 = vsub.f32 %v923_v14, %v1004_v20 }
 0x8eb   : > { %v1008_v23 = vmul.f32 %v1006_v21, %v1006_v21  ;;  %v1009_v24 = vmul.f32 %v1007_v22, %v1007_v22 }
 0x8ed   : > { %v1010_v25 = vadd.f32 %v1009_v24, %v1008_v23 }
 0x8ef   : > { %1011 = vadd.xlane.f32.xlu0 %v1010_v25 }
 0x905   : > { %1094 = vperm.xlu0 %1610, %v1091_v26  }
 0x97c   : > { %v1012_v27 = vpop.xlane.xlu0 %1011 }
 0x97d   : > { %1519 = vmatpush3.msra.mxu1 %v1012_v27 }
 0x97e   : > { %1521 = vmatmul.mubr.msk.f32.vlgmr.msra.gmra.mrb[6].mxu1 %vm457_vm1, %v2021_v13 }
 0x97f   : > { %1153 = vmatprep.mubr.bf16.mxu1 %v1777_v0 }
 0x984   : > { %v1095_v36 = vpop.permute.xlu0 %1094 }
 0xa51   : > { %v1079_v28 = vpop.f32.mrb[6].mxu1 }
 0xa52   : > { %v1080_v29 = vadd.f32 1e-05, %v1079_v28  ;;  %v1522_v30 = vpop.f32.mrb[7].mxu1 }
 0xa54   : > { %1614 = vrsqrt.f32 %v1080_v29 }
 0xa5e   : > { %v1615_v31 = vpop.eup %1614 }
 0xa5f   : > { %1086 = vperm.xlu1 %1611, %v1615_v31  }
 0xa63   : > { %1102 = vperm.xlu1 %1611, %v1099_v32  }
 0xade   : > { %v1087_v33 = vpop.permute.xlu1 %1086 }
 0xadf   : > { %v1089_v34 = vmul.f32 %v1087_v33, %v1006_v21  ;;  %v1090_v35 = vmul.f32 %v1087_v33, %v1007_v22 }
 0xae1   : > { %v1097_v37 = vmul.f32 %v1095_v36, %v1089_v34  ;;  %v1098_v38 = vmul.f32 %v1095_v36, %v1090_v35 }
 0xae2   : > { %v1103_v41 = vpop.permute.xlu1 %1102 }
 0xae3   : > { %v1105_v42 = vadd.f32 %v1103_v41, %v1097_v37  ;;  %v1106_v0 = vadd.f32 %v1103_v41, %v1098_v38 }
 0xae5   : > { %v1107_v46 = vmax.f32 %v1105_v42, 0.0  ;;  %v1108_v47 = vmax.f32 %v1106_v0, 0.0 }
 0xae7   : > { %v1110_v48 = vpack.c.bf16 %v1107_v46, %v1107_v46  ;;  %v1111_v49 = vpack.c.bf16 %v1108_v47, %v1108_v47 }
 0xae9   : > { %1480 = vmatprep.subr.msk.bf16.mxu1 %vm461_vm0, %v1111_v49  ;;  %v1116_v50 = vsel %vm461_vm0, %v1110_v48, 0 }
 0xaea   : > { %1122 = vmatpush1.bf16.msra.mxu1 %v1116_v50 }
 0xaeb   : > { %1523 = vmatprep.subr.mxu1 %v1778_v7 }
 0xaed   : > { %1481 = vmatmul.mubr.msk.bf16.vlgmr.msra.gmra.mrb[8].mxu1 %vm457_vm1, %v1109_v51 }
 0xaee   : > { %1525 = vmatprep.mubr.msk.f32.mxu1 %vm1779_vm2, %v1778_v7 }
 0xbc0   : > { %v1155_v52 = vpop.f32.mrb[8].mxu1 }
 0xbc1   : > { %v1157_v53 = vpop.f32.mrb[9].mxu1 }
 0xbc2   : > { %v1159_v54 = vpop.f32.mrb[10].mxu1  ;;  %v1162_v55 = vadd.f32 %v1157_v53, %v1155_v52 }
 0xbc3   : > { %v1160_v56 = vpop.f32.mrb[11].mxu1 }
 0xbc4   : > { %1163 = vadd.xlane.f32.xlu1 %v1162_v55 }
 0xc51   : > { %v1164_v57 = vpop.xlane.xlu1 %1163 }
 0xc52   : > { %1524 = vmatpush3.msra.mxu1 %v1164_v57 }
 0xc53   : > { %1526 = vmatmul.mubr.msk.f32.vlgmr.msra.gmra.mrb[12].mxu1 %vm457_vm1, %v2021_v13  ;;  %1528 = vmatprep.subr.mxu1 %v1778_v7 }
 0xc54   : > { %1530 = vmatprep.mubr.msk.f32.mxu1 %vm1779_vm2, %v1778_v7 }
 0xd26   : > { %v1231_v58 = vpop.f32.mrb[12].mxu1 }
 0xd27   : > { %1237 = vperm.xlu0 %1610, %v1231_v58   ;;  %v1527_v59 = vpop.f32.mrb[13].mxu1 }
 0xda6   : > { %v1238_v60 = vpop.permute.xlu0 %1237 }
 0xda7   : > { %v1240_v61 = vsub.f32 %v1155_v52, %v1238_v60  ;;  %v1241_v3 = vsub.f32 %v1157_v53, %v1238_v60 }
 0xda9   : > { %v1242_v4 = vmul.f32 %v1240_v61, %v1240_v61  ;;  %v1243_v39 = vmul.f32 %v1241_v3, %v1241_v3 }
 0xdab   : > { %v1244_v5 = vadd.f32 %v1243_v39, %v1242_v4 }
 0xdad   : > { %1245 = vadd.xlane.f32.xlu0 %v1244_v5 }
 0xdc3   : > { %1328 = vperm.xlu0 %1610, %v1325_v6  }
 0xe3a   : > { %v1246_v40 = vpop.xlane.xlu0 %1245 }
 0xe3b   : > { %1529 = vmatpush3.msra.mxu1 %v1246_v40 }
 0xe3c   : > { %1531 = vmatmul.mubr.msk.f32.vlgmr.msra.gmra.mrb[14].mxu1 %vm457_vm1, %v2021_v13 }
 0xe42   : > { %v1329_v63 = vpop.permute.xlu0 %1328 }
 0xf0f   : > { %v1313_v7 = vpop.f32.mrb[14].mxu1 }
 0xf10   : > { %v1314_v8 = vadd.f32 1e-05, %v1313_v7  ;;  %v1532_v9 = vpop.f32.mrb[15].mxu1 }
 0xf12   : > { %1616 = vrsqrt.f32 %v1314_v8 }
 0xf1c   : > { %v1617_v10 = vpop.eup %1616 }
 0xf1d   : > { %1320 = vperm.xlu1 %1611, %v1617_v10  }
 0xf21   : > { %1336 = vperm.xlu1 %1611, %v1333_v11  }
 0xf9c   : > { %v1321_v44 = vpop.permute.xlu1 %1320 }
 0xf9d   : > { %v1323_v12 = vmul.f32 %v1321_v44, %v1240_v61  ;;  %v1324_v45 = vmul.f32 %v1321_v44, %v1241_v3 }
 0xf9f   : > { %v1331_v62 = vmul.f32 %v1329_v63, %v1323_v12  ;;  %v1332_v13 = vmul.f32 %v1329_v63, %v1324_v45 }
 0xfa0   : > { %v1337_v14 = vpop.permute.xlu1 %1336 }
 0xfa1   : > { %v1339_v15 = vadd.f32 %v1337_v14, %v1331_v62  ;;  %v1340_v16 = vadd.f32 %v1337_v14, %v1332_v13 }
 0xfa3   : > { %v1341_v43 = vadd.f32 %v1339_v15, %v2005_v2  ;;  %v1342_v17 = vadd.f32 %v1340_v16, %v2003_v1 }
 0xfa5   : > { %v1343_v18 = vmax.f32 %v1341_v43, 0.0  ;;  %v1344_v19 = vmax.f32 %v1342_v17, 0.0 }
 0xfa7   : > { %1345 = vst [vmem:[%s444_s19] sm:$0xff] %v1343_v18  ;;  %1346 = vst [vmem:[%s444_s19 + $0x8] sm:$0xff] %v1344_v19 }
 0xfa8   : > { %1715 = shalt.err (!%p1712_p11)
}
 0xfa9   : > { %s1716_s27 = scalar_lea.hbm %s2181_s20, 256  ;;  %s1720_s16 = scalar_lea.hbm %s2235_s12, 512 }
 0xfaa   : > { %p1717_p13 = scmp.ne.s32.totalorder %s2181_s20, %s1716_s27  ;;  %p1721_p6 = scmp.lt.u32.totalorder %s2181_s20, %s2235_s12 }
 0xfab   : > { %p1722_p5 = scmp.lt.u32.totalorder %s1720_s16, %s1716_s27  ;;  %p1724_p12 = scmp.lt.u32.totalorder %s1716_s27, %s2181_s20 }
 0xfac   : > { %p1718_p1 = pnand %p1717_p13, %p2261_p10 }
 0xfad   : > { %p1723_p9 = por %p1722_p5, %p1721_p6 }
 0xfae   : > { %p1719_p0 = pneg %p1718_p1 }
 0xfaf   : > { %p1725_p2 = por %p1724_p12, %p1723_p9 }
 0xfb1   : > { %p1726_p3 = pnand %p1725_p2, %p1719_p0 }
 0xfb3   : > { %1729 = shalt.err (!%p1726_p3)
}
 0xfb4   : > { %1545 = dma.vmem_to_hbm [thread:$0]  (%p2261_p10), %s2183_s17, 256, %s2181_s20, %s1348_s25  }
 0xfb5 PF: > { %s2262_s19 = sld [smem:[#allocation14_spill]]  ;;  %s2263_s21 = sld [smem:[#allocation12_spill]] }
 0xfb6   : > { %s2264_s15 = sld [smem:[#allocation17_spill]] }
 0xfbb   : > { %p1567_p4 = scmp.ge.s32.totalorder %s2262_s19, 2  ;;  %s1374_s28 = sand.u32 1, %s2263_s21  }
 0xfbc   : > { %p2265_p7 = scmp.ne.s32.totalorder %s2264_s15, 0  ;;  %s1375_s18 = scalar_lea.sflag [#allocation4], %s1374_s28 }
 0xfbe   : > { %p1558_p8 = pnand %p1567_p4, %p2265_p7 }
 0xfc0   : > { %1755 = dma.done.wait (!%p1558_p8), %s1375_s18, 256  }
 0xfc1   : > { %1757 = vsyncadd (!%p1558_p8), %s1375_s18, 4294967040  ;;  %s2266_s24 = sld [smem:[#allocation15_spill]]  ;;  %s2267_s23 = sld [smem:[#allocation13_spill]] }
 0xfc2   : > { %s2268_s27 = sld [smem:[#allocation16_spill]]  ;;  %s2269_s21 = smov %s1764_s22 }
 0xfc7   : > { %p24_p11 = scmp.ge.s32.totalorder %s2266_s24, 4   ;;  %s2270_s22 = smov %s2267_s23 }
 0xfc8   : > { %s2271_s23 = smov %s2268_s27 }
 0xfc9   :  { %26 = sbr.rel (!%p24_p11) target bundleno = 5 (0x5), region = 123 }
 0xfd0   :  { %1380 = vsyncpa [#allocation3], 1 }
 0xfd1   :  { %1382 = vsyncpa [#allocation3 + $0x1], 1 }
 0xfd2   :  { %1383 = vsyncpa [#allocation6], 1 }
 0xfd3   :  { %1384 = vsyncpa [#allocation4], 1 }
 0xfd4   :  { %1386 = vsyncpa [#allocation4 + $0x1], 1 }

</bundles_post_ra>
